<compile_context>
chip_gen: v7x
topology: tpu7x:2x2x1
jax: 0.10.0
libtpu: 0.0.40
codegen_flags: <defaults>
</compile_context>

<pallas_src>
import jax
import jax.numpy as jnp
from jax import lax
from jax.experimental import pallas as pl
from jax.experimental.pallas import tpu as pltpu


def _round_up(x, m):
    return ((x + m - 1) // m) * m


def _cdiv(a, b):
    return (a + b - 1) // b


def _vmem_limit_bytes():
    """Per-kernel scoped-VMEM limit derived from physical capacity."""
    cap = 128 * 1024 * 1024
    try:
        info = pltpu.get_tpu_info()
        cap = int(getattr(info, "vmem_capacity_bytes", cap))
    except Exception:
        pass
    if cap <= 64 * 1024 * 1024:
        # v7x-class: 64 MiB physical per TC -> ~44 MiB scoped, with headroom
        # for Mosaic-internal scratch.
        return min(44 * 1024 * 1024, int(cap * 0.70))
    # v5e / v6e: 128 MiB physical -> 64 MiB scoped (v5e default is only 16 MiB,
    # so the explicit raise matters most there).
    return min(cap // 2, 64 * 1024 * 1024)


def _choose_tiles(B, C, itemsize, usable_bytes):
    """Pick (tile_b, tile_c) so I/O buffers + temporaries + scratch fit VMEM."""
    sublane = {4: 8, 2: 16, 1: 32}.get(itemsize, 8)
    c_pad = _round_up(C, 128)
    b_pad = _round_up(B, sublane)

    # Target >= ~8 MiB of input (both operands) per grid step so the ~0.35us
    # per-step pipeline overhead is amortized; cap rows at 4096.
    target_step_bytes = 8 * 1024 * 1024
    want_tb = _round_up(_cdiv(target_step_bytes, 2 * c_pad * itemsize), sublane)
    want_tb = max(sublane, min(want_tb, b_pad, 4096))

    def need(tb, tc_pad, with_scratch):
        io = 2 * 2 * tb * tc_pad * itemsize        # 2 inputs, double-buffered
        temps = 3 * tb * tc_pad * 4                # hit / where(col) / masked-x
        scratch = (2 * tb * 128 * 4) if with_scratch else 0
        return io + temps + scratch

    # Fast path: whole class row per block (nc == 1, scratch-free kernel).
    tb = want_tb
    while tb > sublane and need(tb, c_pad, False) > usable_bytes:
        tb = max(sublane, _round_up(tb // 2, sublane))
    if need(tb, c_pad, False) <= usable_bytes:
        return tb, C

    # Otherwise tile the class axis, keeping a reasonably large batch tile.
    tb = min(want_tb, 1024)
    while tb > sublane:
        tc = (usable_bytes - 2 * tb * 128 * 4) // (tb * (4 * itemsize + 12))
        tc = (tc // 128) * 128
        if tc >= 128:
            return tb, min(tc, c_pad)
        tb = max(sublane, _round_up(tb // 2, sublane))
    return sublane, 128   # tiny-VMEM fallback


def _make_kernel(B, C, tile_b, tile_c, nb, nc, mask_val, acc_dtype):
    needs_row_mask = (nb * tile_b != B)
    needs_col_mask = (nc * tile_c != C)

    def tile_argmax(x, col):
        # x: (tile_b, tile_c) in its native dtype; col: (1, tile_c) int32.
        if needs_col_mask:
            x = jnp.where(col < C, x, mask_val)
        tmax = jnp.max(x, axis=1, keepdims=True)
        # No extra `hit & valid_col` mask: padded columns (masked to mask_val)
        # can only hit when every valid entry equals mask_val, and their col
        # indices (>= C) then lose the min anyway.
        hit = x == tmax
        cidx = jnp.min(jnp.where(hit, col, C), axis=1, keepdims=True)
        return tmax, cidx

    def row_masked_count(mism, i):
        if needs_row_mask:
            row = i * tile_b + lax.broadcasted_iota(jnp.int32, (tile_b, 1), 0)
            mism = mism & (row < B)
        return jnp.sum(mism.astype(jnp.int32))

    if nc == 1:
        # Scratch-free fast path: whole class axis in one block.
        def kernel(b1_ref, b2_ref, out_ref):
            i = pl.program_id(0)
            col = lax.broadcasted_iota(jnp.int32, (1, tile_c), 1)
            _, cidx1 = tile_argmax(b1_ref[...], col)
            _, cidx2 = tile_argmax(b2_ref[...], col)
            count = row_masked_count(cidx1 != cidx2, i)
            out_ref[...] = jnp.broadcast_to(count, out_ref.shape)

        return kernel

    def kernel(b1_ref, b2_ref, out_ref, max_ref, idx_ref):
        i = pl.program_id(0)   # batch tile  ("parallel")
        j = pl.program_id(1)   # class tile  ("arbitrary" reduction)
        col = j * tile_c + lax.broadcasted_iota(jnp.int32, (1, tile_c), 1)

        tmax1, cidx1 = tile_argmax(b1_ref[...], col)
        tmax2, cidx2 = tile_argmax(b2_ref[...], col)
        # Only the (tile_b, 1) tile-max is upcast for the running scratch.
        tmax1 = tmax1.astype(acc_dtype)
        tmax2 = tmax2.astype(acc_dtype)

        # Pack both inputs' running state into single (tile_b, 2) tensors via
        # a broadcast select (lane 0 = input1, lane 1 = input2).
        lane = lax.broadcasted_iota(jnp.int32, (1, 2), 1)
        tmax = jnp.where(lane == 0, tmax1, tmax2)   # (tile_b, 2)
        cidx = jnp.where(lane == 0, cidx1, cidx2)   # (tile_b, 2)

        @pl.when(j == 0)
        def _init():
            max_ref[...] = tmax
            idx_ref[...] = cidx

        @pl.when(j > 0)
        def _merge():
            # Strictly-greater update => earlier class tile wins ties
            # (first-occurrence semantics, matching torch.argmax).
            better = tmax > max_ref[...]
            idx_ref[...] = jnp.where(better, cidx, idx_ref[...])
            max_ref[...] = jnp.maximum(max_ref[...], tmax)

        @pl.when(j == nc - 1)
        def _finalize():
            idx = idx_ref[...]                       # (tile_b, 2)
            # The two indices differ iff max != min over the 2-lane axis.
            mism = (jnp.max(idx, axis=1, keepdims=True)
                    != jnp.min(idx, axis=1, keepdims=True))
            count = row_masked_count(mism, i)
            out_ref[...] = jnp.broadcast_to(count, out_ref.shape)

    return kernel


def argmax_difference_loss(batch1, batch2, *, tile_b=None, tile_c=None,
                           vmem_limit_bytes=None):
    assert batch1.shape == batch2.shape and batch1.ndim == 2
    assert batch1.dtype == batch2.dtype
    B, C = batch1.shape
    dtype = batch1.dtype
    itemsize = jnp.dtype(dtype).itemsize
    sublane = {4: 8, 2: 16, 1: 32}.get(itemsize, 8)

    if jnp.issubdtype(dtype, jnp.floating):
        mask_val = float("-inf")
        acc_dtype = jnp.float32
    else:
        mask_val = int(jnp.iinfo(dtype).min)
        acc_dtype = jnp.int32

    if vmem_limit_bytes is None:
        vmem_limit_bytes = _vmem_limit_bytes()
    usable = int(vmem_limit_bytes * 0.60)   # conservative: temps counted too

    auto_tb, auto_tc = _choose_tiles(B, C, itemsize, usable)
    if tile_b is None:
        tile_b = auto_tb
        # Keep nb >= 2 so the "parallel" batch axis can shard across the two
        # v7x TensorCores (one harmless extra grid step on v5e/v6e).
        if tile_b >= B and B > sublane:
            tile_b = max(sublane, _round_up(_cdiv(B, 2), sublane))
    if tile_c is None:
        tile_c = auto_tc

    nb = _cdiv(B, tile_b)
    nc = _cdiv(C, tile_c)

    kernel = _make_kernel(B, C, tile_b, tile_c, nb, nc, mask_val, acc_dtype)

    if nc == 1:
        grid_spec = pltpu.PrefetchScalarGridSpec(
            num_scalar_prefetch=0,
            grid=(nb,),
            in_specs=[
                pl.BlockSpec((tile_b, tile_c), lambda i: (i, 0)),
                pl.BlockSpec((tile_b, tile_c), lambda i: (i, 0)),
            ],
            out_specs=pl.BlockSpec((1, 8, 128), lambda i: (i, 0, 0)),
            scratch_shapes=[],
        )
        dim_sem = ("parallel",)
    else:
        grid_spec = pltpu.PrefetchScalarGridSpec(
            num_scalar_prefetch=0,
            grid=(nb, nc),
            in_specs=[
                pl.BlockSpec((tile_b, tile_c), lambda i, j: (i, j)),
                pl.BlockSpec((tile_b, tile_c), lambda i, j: (i, j)),
            ],
            out_specs=pl.BlockSpec((1, 8, 128), lambda i, j: (i, 0, 0)),
            scratch_shapes=[
                pltpu.VMEM((tile_b, 2), acc_dtype),  # running max (both inputs)
                pltpu.VMEM((tile_b, 2), jnp.int32),  # running argmax (both)
            ],
        )
        dim_sem = ("parallel", "arbitrary")

    partial = pl.pallas_call(
        kernel,
        out_shape=jax.ShapeDtypeStruct((nb, 8, 128), jnp.int32),
        grid_spec=grid_spec,
        compiler_params=pltpu.CompilerParams(
            dimension_semantics=dim_sem,
            vmem_limit_bytes=int(vmem_limit_bytes),
        ),
    )(batch1, batch2)

    total = jnp.sum(partial[:, 0, 0])   # exact int32 partial-count reduction
    return total.astype(jnp.float32) / jnp.float32(B)


if __name__ == "__main__":
    key = jax.random.PRNGKey(0)
    k1, k2, k3, k4, k5, k6 = jax.random.split(key, 6)

    def ref_loss(a, b):
        return jnp.mean(
            (jnp.argmax(a, axis=1) != jnp.argmax(b, axis=1)).astype(jnp.float32)
        )

    # Test 1: small aligned shape (scratch-free fast path, nc == 1).
    B, C = 16, 32
    a1 = jax.random.normal(k1, (B, C), dtype=jnp.float32)
    a2 = jax.random.normal(k2, (B, C), dtype=jnp.float32)
    a2 = a2.at[:4].set(a1[:4])              # make some rows agree
    loss1 = jax.block_until_ready(argmax_difference_loss(a1, a2))
    assert abs(float(loss1) - float(ref_loss(a1, a2))) < 1e-6, (
        float(loss1), float(ref_loss(a1, a2)))

    # Test 2: non-divisible shape exercising class-axis tiling + row/col masks.
    B2, C2 = 20, 300
    b1 = jax.random.normal(k3, (B2, C2), dtype=jnp.float32)
    b2 = jax.random.normal(k4, (B2, C2), dtype=jnp.float32)
    b2 = b2.at[::3].set(b1[::3])
    loss2 = jax.block_until_ready(
        argmax_difference_loss(b1, b2, tile_b=8, tile_c=128))
    assert abs(float(loss2) - float(ref_loss(b1, b2))) < 1e-6, (
        float(loss2), float(ref_loss(b1, b2)))

    # Test 3: bf16 inputs (native-dtype compute path, no full-tile f32 cast).
    B3, C3 = 24, 200
    c1 = jax.random.normal(k5, (B3, C3), dtype=jnp.float32).astype(jnp.bfloat16)
    c2 = jax.random.normal(k6, (B3, C3), dtype=jnp.float32).astype(jnp.bfloat16)
    c2 = c2.at[::2].set(c1[::2])
    loss3 = jax.block_until_ready(argmax_difference_loss(c1, c2))
    assert abs(float(loss3) - float(ref_loss(c1, c2))) < 1e-6, (
        float(loss3), float(ref_loss(c1, c2)))

    print("KERNEL_OK")
</pallas_src>

<mosaic_0001>
module attributes {stable_mosaic.version = 11 : i64} {
  func.func @kernel(%arg0: i32, %arg1: memref<8x32xf32, #tpu.memory_space<vmem>>, %arg2: memref<8x32xf32, #tpu.memory_space<vmem>>, %arg3: memref<1x8x128xi32, #tpu.memory_space<vmem>>) attributes {dimension_semantics = [#tpu.dimension_semantics<parallel>], iteration_bounds = array<i64: 2>, scalar_prefetch = 0 : i64, scratch_operands = 0 : i64, tpu.core_type = #tpu.core_type<tc>, window_params = [{transform_indices = @transform_0, window_bounds = array<i64: 8, 32>}, {transform_indices = @transform_1, window_bounds = array<i64: 8, 32>}, {transform_indices = @transform_2, window_bounds = array<i64: 1, 8, 128>}]} {
    %0 = tpu.iota {dimensions = array<i32: 1>} : vector<1x32xi32>
    %c0 = arith.constant 0 : index
    %c0_0 = arith.constant 0 : index
    %1 = vector.load %arg1[%c0, %c0_0] : memref<8x32xf32, #tpu.memory_space<vmem>>, vector<8x32xf32>
    %cst = arith.constant dense<0xFF800000> : vector<8xf32>
    %2 = vector.multi_reduction <maximumf>, %1, %cst [1] : vector<8x32xf32> to vector<8xf32>
    %3 = vector.shape_cast %2 : vector<8xf32> to vector<8x1xf32>
    %4 = vector.broadcast %3 : vector<8x1xf32> to vector<8x32xf32>
    %5 = arith.cmpf oeq, %1, %4 : vector<8x32xf32>
    %c32_i32 = arith.constant 32 : i32
    %6 = vector.shape_cast %0 : vector<1x32xi32> to vector<1x32xi32>
    %7 = vector.broadcast %6 : vector<1x32xi32> to vector<8x32xi32>
    %8 = vector.broadcast %c32_i32 : i32 to vector<8x32xi32>
    %9 = arith.select %5, %7, %8 : vector<8x32xi1>, vector<8x32xi32>
    %cst_1 = arith.constant dense<2147483647> : vector<8xi32>
    %10 = vector.multi_reduction <minsi>, %9, %cst_1 [1] : vector<8x32xi32> to vector<8xi32>
    %11 = vector.shape_cast %10 : vector<8xi32> to vector<8x1xi32>
    %c0_2 = arith.constant 0 : index
    %c0_3 = arith.constant 0 : index
    %12 = vector.load %arg2[%c0_2, %c0_3] : memref<8x32xf32, #tpu.memory_space<vmem>>, vector<8x32xf32>
    %cst_4 = arith.constant dense<0xFF800000> : vector<8xf32>
    %13 = vector.multi_reduction <maximumf>, %12, %cst_4 [1] : vector<8x32xf32> to vector<8xf32>
    %14 = vector.shape_cast %13 : vector<8xf32> to vector<8x1xf32>
    %15 = vector.broadcast %14 : vector<8x1xf32> to vector<8x32xf32>
    %16 = arith.cmpf oeq, %12, %15 : vector<8x32xf32>
    %c32_i32_5 = arith.constant 32 : i32
    %17 = vector.shape_cast %0 : vector<1x32xi32> to vector<1x32xi32>
    %18 = vector.broadcast %17 : vector<1x32xi32> to vector<8x32xi32>
    %19 = vector.broadcast %c32_i32_5 : i32 to vector<8x32xi32>
    %20 = arith.select %16, %18, %19 : vector<8x32xi1>, vector<8x32xi32>
    %cst_6 = arith.constant dense<2147483647> : vector<8xi32>
    %21 = vector.multi_reduction <minsi>, %20, %cst_6 [1] : vector<8x32xi32> to vector<8xi32>
    %22 = vector.shape_cast %21 : vector<8xi32> to vector<8x1xi32>
    %23 = arith.cmpi ne, %11, %22 : vector<8x1xi32>
    %24 = arith.extui %23 : vector<8x1xi1> to vector<8x1xi32>
    %25 = vector.shape_cast %24 : vector<8x1xi32> to vector<1x8x1xi32>
    %cst_7 = arith.constant dense<0> : vector<1xi32>
    %26 = vector.multi_reduction <add>, %25, %cst_7 [1, 2] : vector<1x8x1xi32> to vector<1xi32>
    %27 = vector.shape_cast %26 : vector<1xi32> to vector<1x1x1xi32>
    %28 = vector.extract %27[0, 0, 0] : i32 from vector<1x1x1xi32>
    %29 = vector.broadcast %28 : i32 to vector<1x8x128xi32>
    %c0_8 = arith.constant 0 : index
    %c0_9 = arith.constant 0 : index
    %c0_10 = arith.constant 0 : index
    %30 = vector.load %arg3[%c0_8, %c0_9, %c0_10] : memref<1x8x128xi32, #tpu.memory_space<vmem>>, vector<1x8x128xi32>
    tpu.vector_store %arg3[%c0_8, %c0_9, %c0_10], %29 {strides = array<i32>} : memref<1x8x128xi32, #tpu.memory_space<vmem>>, vector<1x8x128xi32>,
    return
  }
  func.func @transform_0(%arg0: i32) -> (i32, i32) {
    %c0_i32 = arith.constant 0 : i32
    %c0_i32_0 = arith.constant 0 : i32
    return %arg0, %c0_i32 : i32, i32
  }
  func.func @transform_1(%arg0: i32) -> (i32, i32) {
    %c0_i32 = arith.constant 0 : i32
    %c0_i32_0 = arith.constant 0 : i32
    return %arg0, %c0_i32 : i32, i32
  }
  func.func @transform_2(%arg0: i32) -> (i32, i32, i32) {
    %c0_i32 = arith.constant 0 : i32
    %c0_i32_0 = arith.constant 0 : i32
    %c0_i32_1 = arith.constant 0 : i32
    return %arg0, %c0_i32, %c0_i32_0 : i32, i32, i32
  }
}

</mosaic_0001>

<bundles_post_ra>
// kernel: tpu_custom_call.1
= control target key start
LH: loop header
LB: loop body
LE: loop exit
PB: predicated region body
PF: predicated region fallthrough
CT: control target
= control target key end

     0   :  { %7 = vsyncpa [#allocation3], 0  ;;  %s797_s0 = inlined_call_operand.hbm [shape: f32[16,32], index: 0, kind: input, shape index: {}]   ;;  %s798_s1 = inlined_call_operand.hbm [shape: f32[16,32], index: 1, kind: input, shape index: {}]   ;;  %s799_s2 = inlined_call_operand.hbm [shape: s32[2,8,128], index: 2, kind: output, shape index: {}]  }
   0x1   :  { %9 = vsyncpa [#allocation3 + $0x1], 0 }
   0x2   :  { %10 = vsyncpa [#allocation6], 0 }
   0x3   :  { %12 = vsyncpa [#allocation6 + $0x1], 0 }
   0x4   :  { %13 = vsyncpa [#allocation4], 0 }
   0x5   :  { %15 = vsyncpa [#allocation4 + $0x1], 0  ;;  %s579_s9 = smov 0   ;;  %s581_s10 = smov 0  }
   0x6   :  { %s583_s11 = smov 0   ;;  %s585_s12 = smov 0  }
   0x7 LB: > { %s600_s13 = sadd.s32 4294967295, %s558_s12   ;;  %s359_s14 = sadd.s32 4294967294, %s558_s12   ;;  %s558_s12 = sphi %s585_s12, %s818_s12   ;;  %s554_s11 = sphi %s583_s11, %s817_s11   ;;  %s550_s10 = sphi %s581_s10, %s816_s10   ;;  %s546_s9 = sphi %s579_s9, %s815_s9  }
   0x8   : > { %s604_s15 = sadd.s32 1, %s558_s12   ;;  %s28_s16 = sadd.s32 1, %s554_s11 }
   0x9   : > { %s25_s17 = ssub.s32 %s558_s12, %s604_s15  ;;  %p35_p0 = scmp.ne.s32.totalorder %s554_s11, %s550_s10 }
   0xa   : > { %p26_p1 = scmp.eq.s32.totalorder %s25_s17, 0  ;;  %p36_p2 = scmp.eq.s32.totalorder %s558_s12, 0 }
   0xb   : > { %p41_p3 = scmp.ne.s32.totalorder %s550_s10, %s546_s9  ;;  %p42_p4 = scmp.eq.s32.totalorder %s600_s13, 0 }
   0xc   : > { %s616_s18 = scalar_select %p26_p1, %s554_s11, %s28_s16  }
   0xd   : > { %p618_p5 = por %p36_p2, %p35_p0  ;;  %p622_p6 = por %p42_p4, %p41_p3 }
   0xe   : > { %p91_p7 = scmp.eq.s32.totalorder %s600_s13, 1  ;;  %p97_p8 = scmp.eq.s32.totalorder %s359_s14, 1 }
   0xf   : > { %s803_s20 = scalar_select %p622_p6, 1, 0 }
  0x10   : > { %p393_p10 = scmp.lt.s32.totalorder %s558_s12, 2  ;;  %p629_p11 = por %p91_p7, %p35_p0 }
  0x11   : > { %p633_p12 = por %p97_p8, %p41_p3  ;;  %s638_s23 = sand.u32 1, %s554_s11  }
  0x12   : > { %s804_s21 = scalar_select %p629_p11, 1, 0 }
  0x13   : > { %s805_s22 = scalar_select %p633_p12, 1, 0 }
  0x14   : > { %s363_s24 = sshll.u32 %s558_s12, 7  ;;  %s362_s25 = sshll.u32 %s638_s23, 3 }
  0x15   : > { %s647_s28 = scalar_lea.hbm %s797_s0, %s363_s24  ;;  %s121_s29 = scalar_lea.vmem [#allocation2], %s362_s25 }
  0x16   : > { %s128_s30 = sshll.u32 %s121_s29, 4  ;;  %p653_p13 = pnand %p393_p10, %p618_p5  ;;  %s657_s30 = int_to_ptr.vmem [resolvable:$true] %s128_s30 }
  0x17   : > { %s118_s4 = scalar_lea.sflag [#allocation3], %s638_s23  ;;  %s428_s5 = scalar_lea.hbm %s647_s28, 128 }
  0x18   : > { %p429_p2 = scmp.ne.s32.totalorder %s647_s28, %s428_s5  ;;  %p430_p3 = pneg %p653_p13 }
  0x19   : > { %s433_s8 = scalar_lea.hbm %s797_s0, 256  ;;  %p434_p5 = scmp.lt.u32.totalorder %s647_s28, %s797_s0 }
  0x1a   : > { %p431_p4 = pnand %p430_p3, %p429_p2  ;;  %p435_p8 = scmp.lt.u32.totalorder %s433_s8, %s428_s5 }
  0x1b   : > { %p437_p9 = scmp.lt.u32.totalorder %s428_s5, %s647_s28 }
  0x1c   : > { %p432_p7 = pneg %p431_p4  ;;  %p436_p10 = por %p435_p8, %p434_p5 }
  0x1e   : > { %p438_p0 = por %p437_p9, %p436_p10 }
  0x20   : > { %p439_p1 = pnand %p438_p0, %p432_p7 }
  0x22   : > { %442 = shalt.err (!%p439_p1)
}
  0x23   : > { %s443_s17 = scalar_lea.vmem %s657_s30, 128  ;;  %s560_s19 = smov [#allocation2]  }
  0x24   : > { %p444_p2 = scmp.ne.s32.totalorder %s657_s30, %s443_s17  ;;  %s448_s26 = sshll.u32 %s560_s19, 4  ;;  %s449_s26 = int_to_ptr.vmem [resolvable:$false] %s448_s26 }
  0x25   : > { %s450_s27 = scalar_lea.vmem %s449_s26, 256  ;;  %p451_p11 = scmp.lt.s32.totalorder %s657_s30, %s449_s26 }
  0x26   : > { %p446_p4 = pnand %p444_p2, %p430_p3  ;;  %p452_p5 = scmp.lt.s32.totalorder %s450_s27, %s443_s17 }
  0x28   : > { %p447_p12 = pneg %p446_p4  ;;  %p453_p8 = por %p452_p5, %p451_p11 }
  0x2a   : > { %p454_p9 = pnand %p453_p8, %p447_p12 }
  0x2c   : > { %457 = shalt.err (!%p454_p9)
}
  0x2d   : > { %385 = dma.hbm_to_vmem [thread:$0]  (!%p653_p13), %s647_s28, 128, %s657_s30, %s118_s4  }
  0x2e   : > { %p807_p0 = scmp.lt.s32.totalorder %s558_s12, 3  ;;  %p808_p1 = scmp.ge.s32.totalorder %s558_s12, 1 }
  0x2f   : > { %s700_s7 = scalar_lea.hbm %s798_s1, %s363_s24  ;;  %s139_s8 = scalar_lea.vmem [#allocation5], %s362_s25 }
  0x30   : > { %p691_p7 = pnand %p808_p1, %p807_p0  ;;  %s146_s14 = sshll.u32 %s139_s8, 4  ;;  %s147_s14 = int_to_ptr.vmem [resolvable:$true] %s146_s14 }
  0x31   : > { %s136_s28 = scalar_lea.sflag [#allocation6], %s638_s23  ;;  %s458_s30 = scalar_lea.hbm %s700_s7, 128 }
  0x32   : > { %s809_s29 = scalar_select %p691_p7, 1, 0 }
  0x33   : > { %p459_p11 = scmp.ne.s32.totalorder %s700_s7, %s458_s30  ;;  %s463_s24 = scalar_lea.hbm %s798_s1, 256 }
  0x34   : > { %p464_p2 = scmp.lt.u32.totalorder %s700_s7, %s798_s1  ;;  %p465_p4 = scmp.lt.u32.totalorder %s463_s24, %s458_s30 }
  0x35   : > { %p461_p12 = pnand %p459_p11, %p430_p3  ;;  %p467_p8 = scmp.lt.u32.totalorder %s458_s30, %s700_s7 }
  0x36   : > { %p466_p5 = por %p465_p4, %p464_p2 }
  0x37   : > { %p462_p10 = pneg %p461_p12 }
  0x38   : > { %p468_p9 = por %p467_p8, %p466_p5 }
  0x3a   : > { %p469_p0 = pnand %p468_p9, %p462_p10 }
  0x3c   : > { %472 = shalt.err (!%p469_p0)
}
  0x3d   : > { %s473_s23 = scalar_lea.vmem %s147_s14, 128  ;;  %s561_s25 = smov [#allocation5]  }
  0x3e   : > { %p474_p1 = scmp.ne.s32.totalorder %s147_s14, %s473_s23  ;;  %s478_s26 = sshll.u32 %s561_s25, 4  ;;  %s479_s26 = int_to_ptr.vmem [resolvable:$false] %s478_s26 }
  0x3f   : > { %s480_s27 = scalar_lea.vmem %s479_s26, 256  ;;  %p481_p6 = scmp.lt.s32.totalorder %s147_s14, %s479_s26 }
  0x40   : > { %p476_p11 = pnand %p474_p1, %p430_p3  ;;  %p482_p7 = scmp.lt.s32.totalorder %s480_s27, %s473_s23 }
  0x42   : > { %p477_p12 = pneg %p476_p11  ;;  %p483_p2 = por %p482_p7, %p481_p6 }
  0x44   : > { %p484_p4 = pnand %p483_p2, %p477_p12 }
  0x46   : > { %487 = shalt.err (!%p484_p4)
}
  0x47   : > { %388 = dma.hbm_to_vmem [thread:$0]  (!%p653_p13), %s700_s7, 128, %s147_s14, %s136_s28  }
  0x48   : > { %p810_p10 = scmp.ne.s32.totalorder %s809_s29, 0 }
  0x49   : > { %s727_s5 = sand.u32 (!%p810_p10), 1, %s550_s10   ;;  %p811_p6 = scmp.ne.s32.totalorder (!%p810_p10), %s803_s20, 0 }
  0x4a   : > { %155 = sbr.rel (%p810_p10) target bundleno = 608 (0x260), region = 28  ;;  %s730_s6 = sshll.u32 (!%p810_p10), %s727_s5, 3 }
  0x4b   : > { %s158_s8 = scalar_lea.sflag (!%p810_p10), [#allocation3], %s727_s5  ;;  %s161_s30 = scalar_lea.vmem (!%p810_p10), [#allocation2], %s730_s6 }
  0x51   : > { %533 = dma.done.wait (%p811_p6), %s158_s8, 128  }
  0x52   : > { %535 = vsyncadd (%p811_p6), %s158_s8, 4294967168  ;;  %s167_s3 = scalar_lea.sflag [#allocation6], %s727_s5  ;;  %s170_s29 = scalar_lea.vmem [#allocation5], %s730_s6 }
  0x53   : > { %537 = dma.done.wait (%p811_p6), %s167_s3, 128  }
  0x54   : > { %539 = vsyncadd (%p811_p6), %s167_s3, 4294967168  ;;  %vm199_vm0 = vcmask 261120   ;;  %v198_v0 = vld [vmem:[%s161_s30] sm:$0xff]  ;;  %v220_v1 = vld [vmem:[%s170_s29] sm:$0xff]  ;;  %v196_v4 = vlaneseq  ;;  %v562_v34 = vmov 0   ;;  %s195_s20 = scalar_lea.vmem [#allocation7], %s730_s6 }
  0x55   : > { %v200_v2 = vsel %vm199_vm0, %v198_v0, -inf  ;;  %v221_v3 = vsel %vm199_vm0, %v220_v1, -inf  ;;  %s266_s7 = sshll.u32 %s195_s20, 4  ;;  %s371_s14 = sshll.u32 %s600_s13, 7  ;;  %s750_s7 = int_to_ptr.vmem [resolvable:$true] %s266_s7 }
  0x56   : > { %201 = vmax.xlane.f32.xlu0 %v200_v2  ;;  %v197_v5 = vand.u32 127, %v196_v4  ;;  %s755_s24 = scalar_lea.hbm %s799_s2, %s371_s14  ;;  %s253_s17 = scalar_lea.sflag [#allocation4], %s727_s5 }
  0x57   : > { %s488_s19 = scalar_lea.vmem %s750_s7, 128  ;;  %p812_p3 = scmp.ne.s32.totalorder %s804_s21, 0 }
  0x58   : > { %p489_p13 = scmp.ne.s32.totalorder %s750_s7, %s488_s19  ;;  %s563_s13 = smov [#allocation7]  }
  0x59   : > { %s492_s23 = sshll.u32 %s563_s13, 4  ;;  %s493_s23 = int_to_ptr.vmem [resolvable:$false] %s492_s23 }
  0x5a   : > { %222 = vmax.xlane.f32.xlu0 %v221_v3  ;;  %p490_p7 = pnand %p489_p13, %p812_p3  ;;  %s494_s25 = scalar_lea.vmem %s493_s23, 256 }
  0x5b   : > { %p495_p8 = scmp.lt.s32.totalorder %s750_s7, %s493_s23  ;;  %p496_p9 = scmp.lt.s32.totalorder %s494_s25, %s488_s19 }
  0x5c   : > { %p491_p5 = pneg %p490_p7 }
  0x5d   : > { %p497_p0 = por %p496_p9, %p495_p8 }
  0x5f   : > { %p498_p1 = pnand %p497_p0, %p491_p5 }
  0xe3   : > { %v202_v6 = vpop.xlane.xlu0 %201 }
  0xe4   : > { %vm203_vm1 = vcmp.eq.f32.partialorder %v198_v0, %v202_v6 }
  0xe5   : > { %v204_v7 = vsel %vm203_vm1, %v197_v5, 32 }
  0xe6   : > { %v205_v8 = vsel %vm199_vm0, %v204_v7, 2147483647 }
  0xe7   : > { %v223_v9 = vpop.xlane.xlu0 %222  ;;  %v207_v10 = vshra.s32 %v205_v8, 16  ;;  %v206_v16 = vand.u32 65535, %v205_v8 }
  0xe8   : > { %vm224_vm2 = vcmp.eq.f32.partialorder %v220_v1, %v223_v9 }
  0xe9   : > { %v225_v11 = vsel %vm224_vm2, %v197_v5, 32  ;;  %v209_v12 = vcvt.s32.f32 %v207_v10  ;;  %v208_v18 = vcvt.s32.f32 %v206_v16 }
  0xea   : > { %v226_v13 = vsel %vm199_vm0, %v225_v11, 2147483647 }
  0xeb   : > { %210 = vmin.xlane.f32.xlu1 %v209_v12  ;;  %v228_v14 = vshra.s32 %v226_v13, 16  ;;  %v227_v19 = vand.u32 65535, %v226_v13 }
  0xed   : > { %v230_v15 = vcvt.s32.f32 %v228_v14  ;;  %v229_v22 = vcvt.s32.f32 %v227_v19 }
  0xef   : > { %231 = vmin.xlane.f32.xlu1 %v230_v15 }
 0x178   : > { %v211_v17 = vpop.xlane.xlu1 %210 }
 0x179   : > { %vm212_vm3 = vcmp.eq.f32.partialorder %v209_v12, %v211_v17  ;;  %v217_v25 = vcvt.f32.s32 %v211_v17 }
 0x17a   : > { %v213_v20 = vsel %vm212_vm3, %v208_v18, inf }
 0x17b   : > { %214 = vmin.xlane.f32.xlu0 %v213_v20  ;;  %v218_v29 = vshll.u32 %v217_v25, 16 }
 0x17c   : > { %v232_v21 = vpop.xlane.xlu1 %231 }
 0x17d   : > { %vm233_vm4 = vcmp.eq.f32.partialorder %v230_v15, %v232_v21  ;;  %v238_v26 = vcvt.f32.s32 %v232_v21 }
 0x17e   : > { %v234_v23 = vsel %vm233_vm4, %v229_v22, inf }
 0x17f   : > { %235 = vmin.xlane.f32.xlu1 %v234_v23  ;;  %v239_v30 = vshll.u32 %v238_v26, 16 }
 0x208   : > { %v215_v24 = vpop.xlane.xlu0 %214 }
 0x209   : > { %v216_v27 = vcvt.f32.s32 %v215_v24 }
 0x20b   : > { %v219_v32 = vadd.s32 %v218_v29, %v216_v27 }
 0x20c   : > { %v236_v28 = vpop.xlane.xlu1 %235 }
 0x20d   : > { %v237_v31 = vcvt.f32.s32 %v236_v28 }
 0x20f   : > { %v240_v33 = vadd.s32 %v239_v30, %v237_v31 }
 0x211   : > { %vm241_vm5 = vcmp.ne.s32.totalorder %v219_v32, %v240_v33 }
 0x212   : > { %v242_v35 = vsel %vm241_vm5, 1, %v562_v34 }
 0x213   : > { %v243_v36 = vrot.slane %v242_v35, 4 }
 0x215   : > { %v244_v37 = vadd.s32 %v243_v36, %v242_v35 }
 0x217   : > { %v245_v38 = vrot.slane %v244_v37, 2 }
 0x219   : > { %v246_v39 = vadd.s32 %v245_v38, %v244_v37 }
 0x21b   : > { %v247_v40 = vrot.slane %v246_v39, 1 }
 0x21d   : > { %v248_v41 = vadd.s32 %v247_v40, %v246_v39 }
 0x21f   : > { %374 = vpush %v248_v41 }
 0x250   : > { %s375_s28 = spop %374 }
 0x251   : > { %v250_v42 = vstv %s375_s28 }
 0x252   : > { %251 = vst [vmem:[%s195_s20] sm:$0xff] %v250_v42 }
 0x253   : > { %501 = shalt.err (!%p498_p1)
}
 0x254   : > { %s502_s26 = scalar_lea.hbm %s755_s24, 128  ;;  %s506_s6 = scalar_lea.hbm %s799_s2, 256 }
 0x255   : > { %p503_p11 = scmp.ne.s32.totalorder %s755_s24, %s502_s26  ;;  %p507_p4 = scmp.lt.u32.totalorder %s755_s24, %s799_s2 }
 0x256   : > { %p508_p10 = scmp.lt.u32.totalorder %s506_s6, %s502_s26  ;;  %p510_p13 = scmp.lt.u32.totalorder %s502_s26, %s755_s24 }
 0x257   : > { %p504_p12 = pnand %p503_p11, %p812_p3 }
 0x258   : > { %p509_p6 = por %p508_p10, %p507_p4 }
 0x259   : > { %p505_p2 = pneg %p504_p12 }
 0x25a   : > { %p511_p7 = por %p510_p13, %p509_p6 }
 0x25c   : > { %p512_p5 = pnand %p511_p7, %p505_p2 }
 0x25e   : > { %515 = shalt.err (!%p512_p5)
}
 0x25f   : > { %380 = dma.vmem_to_hbm [thread:$0]  (%p812_p3), %s750_s7, 128, %s755_s24, %s253_s17  }
 0x260 PF: > { %s278_s3 = sand.u32 1, %s546_s9   ;;  %p813_p8 = scmp.ne.s32.totalorder %s805_s22, 0 }
 0x261   : > { %p814_p9 = scmp.ge.s32.totalorder %s558_s12, 2  ;;  %s279_s29 = scalar_lea.sflag [#allocation4], %s278_s3 }
 0x263   : > { %p390_p0 = pnand %p814_p9, %p813_p8 }
 0x265   : > { %541 = dma.done.wait (!%p390_p0), %s279_s29, 128  }
 0x266   : > { %543 = vsyncadd (!%p390_p0), %s279_s29, 4294967168  ;;  %p18_p1 = scmp.ge.s32.totalorder %s604_s15, 4   ;;  %s815_s9 = smov %s550_s10 }
 0x267   : > { %s816_s10 = smov %s554_s11  ;;  %s817_s11 = smov %s616_s18 }
 0x268   : > { %s818_s12 = smov %s604_s15  ;;  %20 = sbr.rel (!%p18_p1) target bundleno = 7 (0x7), region = 86 }
 0x26f   :  { %284 = vsyncpa [#allocation3], 1 }
 0x270   :  { %286 = vsyncpa [#allocation3 + $0x1], 1 }
 0x271   :  { %287 = vsyncpa [#allocation6], 1 }
 0x272   :  { %289 = vsyncpa [#allocation6 + $0x1], 1 }
 0x273   :  { %290 = vsyncpa [#allocation4], 1 }
 0x274   :  { %292 = vsyncpa [#allocation4 + $0x1], 1 }

</bundles_post_ra>
